<compile_context>
chip_gen: v7x
topology: tpu7x:2x2x1
jax: 0.10.0
libtpu: 0.0.40
codegen_flags: <defaults>
</compile_context>

<pallas_src>
import functools
import math

import jax
import jax.numpy as jnp
from jax.experimental import pallas as pl
from jax.experimental.pallas import tpu as pltpu

_LANE = 128  # vreg lane width (last-dim granularity)


def _make_pe(max_len: int, d_model: int, dtype=jnp.float32) -> jnp.ndarray:
    """Positional-encoding buffer identical to the torch __init__ (computed in f32,
    stored in the model dtype so no per-call cast is needed)."""
    position = jnp.arange(max_len, dtype=jnp.float32)[:, None]                  # (L, 1)
    div_term = jnp.exp(
        jnp.arange(0, d_model, 2, dtype=jnp.float32) * (-math.log(10000.0) / d_model)
    )                                                                           # (D/2,)
    pe = jnp.zeros((max_len, d_model), dtype=jnp.float32)
    pe = pe.at[:, 0::2].set(jnp.sin(position * div_term))
    pe = pe.at[:, 1::2].set(jnp.cos(position * div_term))
    return pe[None, :, :].astype(dtype)                                         # (1, L, D)


def _sublane(dtype) -> int:
    """Native sublane packing granularity: f32 -> 8, bf16 -> 16, int8/fp8 -> 32."""
    return max(8, 32 // max(1, jnp.dtype(dtype).itemsize))


@functools.lru_cache(maxsize=None)
def _budgets():
    """(vmem_limit_bytes, pipelined_buffer_budget_bytes, per_tile_target_bytes)."""
    cap = None
    try:
        info = pltpu.get_tpu_info()
        cap = int(getattr(info, "vmem_capacity_bytes", 0)) or None
    except Exception:
        cap = None
    if cap is None:
        cap = 64 * 1024 * 1024  # conservative fallback: v7x per-core VMEM
    vmem_limit = min((cap * 3) // 4, 96 * 1024 * 1024)      # 48 MiB on v7x, 96 MiB on v5e/v6e
    buf_budget = min((vmem_limit * 2) // 3, 64 * 1024 * 1024)
    tile_target = max(2 * 1024 * 1024, min(8 * 1024 * 1024, buf_budget // 8))
    return vmem_limit, buf_budget, tile_target


def _add_pe_kernel(x_ref, pe_ref, o_ref):
    # x/o blocks: (bt, rt, cols); pe block: (1, rt, cols) -> broadcast over batch.
    o_ref[...] = x_ref[...] + pe_ref[...]


def _pick_tiles(B, rows, cols, itemsize, sub, tile_target, buf_budget):
    """Choose (batch_tile, row_tile) sized by bytes, not by divisibility."""
    row_bytes = max(1, cols * itemsize)

    # Row tile: as many rows as hit ~tile_target bytes.  Partial tiles are rounded
    # to the dtype's sublane granularity; a ragged last block is fine (masked).
    want = max(1, tile_target // row_bytes)
    if want >= rows or rows <= sub:
        rt = rows                                   # full dim is always a legal block
    else:
        rt = max(sub, (min(want, rows) // sub) * sub)

    # Batch tile: only when one batch element's rows are tiny.
    bt = 1
    if rt == rows and B > 1:
        tile_bytes = rt * row_bytes
        if tile_bytes < tile_target:
            bt = min(B, max(1, tile_target // tile_bytes))

    # Safety: keep the pipelined working set (x/out double-buffered & batch-tiled,
    # pe double-buffered, batch-invariant) inside the buffer budget.
    def working_set(bt_, rt_):
        return (4 * bt_ + 2) * rt_ * row_bytes

    while bt > 1 and working_set(bt, rt) > buf_budget:
        bt = max(1, bt // 2)
    if working_set(bt, rt) > buf_budget and rt > sub:
        cap_rows = buf_budget // ((4 * bt + 2) * row_bytes)
        rt = min(rt, max(sub, (cap_rows // sub) * sub))
    return bt, rt


def _tiled_add(x, pe, rows, cols, *, donate_x=False):
    """x: (B, rows, cols); pe: (1, >=rows, cols); both already in x.dtype.
    cols is either a multiple of 128 or the full last dim of both arrays."""
    B = x.shape[0]
    itemsize = jnp.dtype(x.dtype).itemsize
    sub = _sublane(x.dtype)
    vmem_limit, buf_budget, tile_target = _budgets()
    bt, rt = _pick_tiles(B, rows, cols, itemsize, sub, tile_target, buf_budget)

    # pe may be longer than `rows` (full max_len buffer).  A row tile that is not
    # sublane-aligned is only legal as a full-dim block, so in that (rare) case
    # materialize the pe[:, :rows] slice once so its row dim matches the tile.
    if rt % sub != 0 and rt != pe.shape[1]:
        pe = pe[:, :rows, :]

    # Batch innermost: pe's block index is constant across the inner axis, so its
    # DMA is issued once per row tile.  (A single-buffered pe block would save one
    # tile of VMEM on v7x, but single-buffering support varies, so we keep the
    # default double buffer — the budget already accounts for it.)
    grid = (pl.cdiv(rows, rt), pl.cdiv(B, bt))
    return pl.pallas_call(
        _add_pe_kernel,
        out_shape=jax.ShapeDtypeStruct((B, rows, cols), x.dtype),
        grid_spec=pltpu.PrefetchScalarGridSpec(
            num_scalar_prefetch=0,
            grid=grid,
            in_specs=[
                pl.BlockSpec((bt, rt, cols), lambda r, b: (b, r, 0)),   # x tile
                pl.BlockSpec((1, rt, cols), lambda r, b: (0, r, 0)),    # pe tile (batch-invariant)
            ],
            out_specs=pl.BlockSpec((bt, rt, cols), lambda r, b: (b, r, 0)),
        ),
        compiler_params=pltpu.CompilerParams(
            dimension_semantics=("parallel", "parallel"),  # lets v7x's 2 TCs split work; no-op on v5e/v6e
            vmem_limit_bytes=vmem_limit,
        ),
        input_output_aliases=({0: 0} if donate_x else {}),
    )(x, pe)


def positional_encoding_forward(x: jnp.ndarray, pe: jnp.ndarray, *, donate_x: bool = False) -> jnp.ndarray:
    """x: (B, S, D); pe: (1, max_len, D). Returns x + pe[:, :S] (computed in x.dtype)."""
    B, S, D = x.shape
    max_len = pe.shape[1]
    if S > max_len:
        raise ValueError(f"sequence length {S} exceeds positional-encoding max_len {max_len}")

    # Precision policy: the add happens in x.dtype.  Build pe with _make_pe(dtype=...)
    # at module-init time so this cast is a no-op on the hot path.
    if pe.dtype != x.dtype:
        pe = pe.astype(x.dtype)

    if D % _LANE == 0:
        # Lane-dense: tile S directly, pass the full-length pe (no sliced copy).
        return _tiled_add(x, pe, S, D, donate_x=donate_x)

    if (S * D) % _LANE == 0:
        # Fold the (S, D) plane into (S*D/128, 128) so the last dim is lane-dense.
        rows = (S * D) // _LANE
        x_f = x.reshape(B, rows, _LANE)
        pe_f = pe[:, :S, :].reshape(1, rows, _LANE)
        out = _tiled_add(x_f, pe_f, rows, _LANE, donate_x=donate_x)
        return out.reshape(B, S, D)

    # No lane-dense fold exists: same tiled kernel with cols = D (full last dim is a
    # legal block).  Stores are masked (unavoidable here) but S is still pipelined
    # and the VMEM working set stays bounded.
    return _tiled_add(x, pe, S, D, donate_x=donate_x)


if __name__ == "__main__":
    key = jax.random.PRNGKey(0)
    k1, k2 = jax.random.split(key)

    # Case 1: module-consistent small shapes (D=32 -> folded to lane-dense 128,
    # tiny per-batch rows -> exercises the batch-tiled block).
    batch, seq, d_model, max_len = 2, 8, 32, 16
    x = jax.random.normal(k1, (batch, seq, d_model), dtype=jnp.float32)
    pe = _make_pe(max_len, d_model, dtype=x.dtype)
    out = jax.block_until_ready(positional_encoding_forward(x, pe))
    ref = x + pe[:, :seq, :]
    assert out.shape == (batch, seq, d_model)
    assert jnp.allclose(out, ref, atol=1e-6), "mismatch vs reference (folded path)"

    # Case 2: lane-dense path (D multiple of 128; full-length pe passed, S tiled).
    b2, s2, d2, l2 = 2, 16, 128, 32
    x2 = jax.random.normal(k2, (b2, s2, d2), dtype=jnp.float32)
    pe2 = _make_pe(l2, d2, dtype=x2.dtype)
    out2 = jax.block_until_ready(positional_encoding_forward(x2, pe2))
    ref2 = x2 + pe2[:, :s2, :]
    assert out2.shape == (b2, s2, d2)
    assert jnp.allclose(out2, ref2, atol=1e-6), "mismatch vs reference (tiled path)"

    print("KERNEL_OK")
</pallas_src>

<mosaic_0001>
module attributes {stable_mosaic.version = 11 : i64} {
  func.func @_add_pe_kernel(%arg0: i32, %arg1: i32, %arg2: memref<2x2x128xf32, #tpu.memory_space<vmem>>, %arg3: memref<1x2x128xf32, #tpu.memory_space<vmem>>, %arg4: memref<2x2x128xf32, #tpu.memory_space<vmem>>) attributes {dimension_semantics = [#tpu.dimension_semantics<parallel>, #tpu.dimension_semantics<parallel>], iteration_bounds = array<i64: 1, 1>, scalar_prefetch = 0 : i64, scratch_operands = 0 : i64, tpu.core_type = #tpu.core_type<tc>, window_params = [{transform_indices = @transform_0, window_bounds = array<i64: 2, 2, 128>}, {transform_indices = @transform_1, window_bounds = array<i64: 1, 2, 128>}, {transform_indices = @transform_2, window_bounds = array<i64: 2, 2, 128>}]} {
    %c0 = arith.constant 0 : index
    %c0_0 = arith.constant 0 : index
    %c0_1 = arith.constant 0 : index
    %0 = vector.load %arg2[%c0, %c0_0, %c0_1] : memref<2x2x128xf32, #tpu.memory_space<vmem>>, vector<2x2x128xf32>
    %c0_2 = arith.constant 0 : index
    %c0_3 = arith.constant 0 : index
    %c0_4 = arith.constant 0 : index
    %1 = vector.load %arg3[%c0_2, %c0_3, %c0_4] : memref<1x2x128xf32, #tpu.memory_space<vmem>>, vector<1x2x128xf32>
    %2 = vector.broadcast %1 : vector<1x2x128xf32> to vector<2x2x128xf32>
    %3 = arith.addf %0, %2 : vector<2x2x128xf32>
    %c0_5 = arith.constant 0 : index
    %c0_6 = arith.constant 0 : index
    %c0_7 = arith.constant 0 : index
    %4 = vector.load %arg4[%c0_5, %c0_6, %c0_7] : memref<2x2x128xf32, #tpu.memory_space<vmem>>, vector<2x2x128xf32>
    tpu.vector_store %arg4[%c0_5, %c0_6, %c0_7], %3 {strides = array<i32>} : memref<2x2x128xf32, #tpu.memory_space<vmem>>, vector<2x2x128xf32>,
    return
  }
  func.func @transform_0(%arg0: i32, %arg1: i32) -> (i32, i32, i32) {
    %c0_i32 = arith.constant 0 : i32
    %c0_i32_0 = arith.constant 0 : i32
    return %arg1, %arg0, %c0_i32 : i32, i32, i32
  }
  func.func @transform_1(%arg0: i32, %arg1: i32) -> (i32, i32, i32) {
    %c0_i32 = arith.constant 0 : i32
    %c0_i32_0 = arith.constant 0 : i32
    %c0_i32_1 = arith.constant 0 : i32
    return %c0_i32, %arg0, %c0_i32_0 : i32, i32, i32
  }
  func.func @transform_2(%arg0: i32, %arg1: i32) -> (i32, i32, i32) {
    %c0_i32 = arith.constant 0 : i32
    %c0_i32_0 = arith.constant 0 : i32
    return %arg1, %arg0, %c0_i32 : i32, i32, i32
  }
}

</mosaic_0001>

<bundles_post_ra>
// kernel: tpu_custom_call.1
= control target key start
LH: loop header
LB: loop body
LE: loop exit
PB: predicated region body
PF: predicated region fallthrough
CT: control target
= control target key end

     0   :  { %7 = vsyncpa [#allocation3], 0  ;;  %s154_s0 = inlined_call_operand.hbm [shape: f32[2,2,128], index: 0, kind: input, shape index: {}]   ;;  %s155_s1 = inlined_call_operand.vmem [shape: f32[1,2,128], index: 1, kind: input, shape index: {}]   ;;  %s156_s2 = inlined_call_operand.hbm [shape: f32[2,2,128], index: 2, kind: output, shape index: {}]  }
   0x1   :  { %8 = vsyncpa [#allocation4], 0  ;;  %s102_s9 = smov [#allocation2]   ;;  %s54_s13 = scalar_lea.hbm %s154_s0, 64 }
   0x2   :  { %s14_s10 = sshll.u32 %s102_s9, 4  ;;  %p55_p0 = scmp.ne.s32.totalorder %s154_s0, %s54_s13  ;;  %s15_s10 = int_to_ptr.vmem [resolvable:$true] %s14_s10 }
   0x3   :  { %p58_p1 = scmp.lt.u32.totalorder %s54_s13, %s154_s0 }
   0x5   :  { %p60_p2 = pnand %p58_p1, %p55_p0 }
   0x7   :  { %63 = shalt.err (!%p60_p2)
}
   0x8   :  { %s64_s18 = scalar_lea.vmem %s15_s10, 64  ;;  %p69_p4 = scmp.lt.s32.totalorder %s15_s10, %s15_s10 }
   0x9   :  { %p65_p3 = scmp.ne.s32.totalorder %s15_s10, %s64_s18  ;;  %p70_p5 = scmp.lt.s32.totalorder %s64_s18, %s64_s18 }
   0xb   :  { %p71_p6 = por %p70_p5, %p69_p4 }
   0xd   :  { %p72_p7 = pnand %p71_p6, %p65_p3 }
   0xf   :  { %75 = shalt.err (!%p72_p7)
}
  0x10   :  { %s103_s19 = smov 32   ;;  %s104_s20 = smov 2  }
  0x11   :  { %20 = dma.hbm_to_vmem [thread:$0]  %s154_s0, 64, %s15_s10, [#allocation3], %s103_s19, %s103_s19, %s104_s20  }
  0x12   :  { %98 = dma.done.wait [#allocation3], 64  }
  0x13   :  { %99 = vsyncadd [#allocation3], 4294967232  ;;  %s105_s23 = smov [#allocation5]   ;;  %v26_v0 = vld [vmem:[#allocation2] sm:$0x3] }
  0x14   :  { %s38_s24 = sshll.u32 %s105_s23, 4  ;;  %v28_v1 = vld [vmem:[%s155_s1] sm:$0x3]  ;;  %v27_v2 = vld [vmem:[#allocation2 + $0x2] sm:$0x3]  ;;  %s39_s24 = int_to_ptr.vmem [resolvable:$true] %s38_s24 }
  0x15   :  { %v29_v3 = vadd.f32 %v28_v1, %v26_v0  ;;  %v30_v4 = vadd.f32 %v28_v1, %v27_v2  ;;  %s76_s27 = scalar_lea.vmem %s39_s24, 64  ;;  %p81_p9 = scmp.lt.s32.totalorder %s39_s24, %s39_s24 }
  0x16   :  { %p77_p8 = scmp.ne.s32.totalorder %s39_s24, %s76_s27  ;;  %p82_p10 = scmp.lt.s32.totalorder %s76_s27, %s76_s27 }
  0x17   :  { %31 = vst [vmem:[#allocation5] sm:$0x3] %v29_v3  ;;  %32 = vst [vmem:[#allocation5 + $0x2] sm:$0x3] %v30_v4 }
  0x18   :  { %p83_p11 = por %p82_p10, %p81_p9 }
  0x1a   :  { %p84_p12 = pnand %p83_p11, %p77_p8 }
  0x1c   :  { %87 = shalt.err (!%p84_p12)
}
  0x1d   :  { %s88_s29 = scalar_lea.hbm %s156_s2, 64 }
  0x1e   :  { %p89_p13 = scmp.ne.s32.totalorder %s156_s2, %s88_s29  ;;  %p92_p0 = scmp.lt.u32.totalorder %s88_s29, %s156_s2 }
  0x20   :  { %p94_p1 = pnand %p92_p0, %p89_p13 }
  0x22   :  { %97 = shalt.err (!%p94_p1)
}
  0x23   :  { %44 = dma.vmem_to_hbm [thread:$0]  %s39_s24, 64, %s156_s2, [#allocation4], %s103_s19, %s103_s19, %s104_s20  }
  0x24   :  { %100 = dma.done.wait [#allocation4], 64  }
  0x25   :  { %101 = vsyncadd [#allocation4], 4294967232 }
  0x26   :  { %48 = vsyncpa [#allocation3], 1 }
  0x27   :  { %49 = vsyncpa [#allocation4], 1 }

</bundles_post_ra>
